<compile_context>
chip_gen: v6e
topology: v6e:2x2x1
jax: 0.10.0
libtpu: 0.0.40
codegen_flags: <defaults>
</compile_context>

<pallas_src>
import jax
import jax.numpy as jnp
from jax.experimental import pallas as pl
from jax.experimental.pallas import tpu as pltpu


# ----------------------------- helpers --------------------------------------


def _round_up(x, m):
    return ((x + m - 1) // m) * m


def _sublane_tile(dtype):
    itemsize = jnp.dtype(dtype).itemsize
    return {4: 8, 2: 16, 1: 32}.get(itemsize, 8)


def _pick_batch_tile(B, row_lanes, in_dtype, out_dtype, target_bytes=8 << 20):
    """Pick a batch tile.

    row_lanes = Fr * D (lane extent of one batch row in the 2D layout).
    Sizing uses *padded* VMEM bytes (lane dim rounded up to 128). Target is
    ~8 MiB of padded rest per grid step; tb is aligned to the sublane tile of
    both dtypes; a divisor of B is only accepted if it is not much smaller than
    the target tile (never collapse to a micro-step grid).
    """
    itemsize = jnp.dtype(in_dtype).itemsize
    align = max(_sublane_tile(in_dtype), _sublane_tile(out_dtype))
    padded_row_bytes = _round_up(row_lanes, 128) * itemsize

    tb = int(target_bytes // padded_row_bytes)
    tb = max(align, tb - tb % align)
    if tb >= B:
        return B

    # Prefer a divisor of B (no partial last block), but only if it is not a
    # tiny tile: accept t if t >= tb/2 or t >= 256.
    floor = max(align, min(tb // 2, 256))
    t = tb
    while t >= floor:
        if B % t == 0:
            return t
        t -= align

    # No acceptable divisor: keep tb and eat one masked partial block.
    # Prefer an even grid length so both v7x TensorCores get balanced work.
    g = -(-B // tb)  # cdiv
    if g > 1 and g % 2 == 1:
        tb_even = max(align, _round_up(-(-B // (g + 1)), align))
        if tb_even >= align and (-(-B // tb_even)) % 2 == 0:
            tb = min(tb, tb_even)
    return tb


# ----------------------------- kernels --------------------------------------


def _make_reduce_kernel(Fr, D):
    def kernel(p_sum_ref, p_sq_ref, rest_ref, out_ref):
        # p_sum_ref: (1, D) f32 VMEM   p_sq_ref: (1, 1) f32 SMEM (total prefix sq-sum)
        # rest_ref:  (tb, Fr*D)        out_ref:  (tb, 1)
        tb = rest_ref.shape[0]
        p_sum = p_sum_ref[...]                                   # (1, D) f32
        p_sq_total = p_sq_ref[0, 0]                              # scalar f32

        r_sum = jnp.zeros((tb, D), jnp.float32)
        r_sq = jnp.zeros((tb, D), jnp.float32)
        # Single pass over fields: static lane slices, no (tb,Fr,D) f32 temp.
        for f in range(Fr):
            sl = rest_ref[:, pl.ds(f * D, D)].astype(jnp.float32)   # (tb, D)
            r_sum = r_sum + sl
            r_sq = r_sq + sl * sl

        s = r_sum + p_sum                                        # (tb, D)
        # Fused final reduction: sum_d(s^2 - r_sq) - sum_d(p^2)
        ix_row = jnp.sum(s * s - r_sq, axis=1, keepdims=True)    # (tb, 1)
        out_ref[...] = (0.5 * (ix_row - p_sq_total)).astype(out_ref.dtype)

    return kernel


def _make_noreduce_kernel(Fr, D):
    def kernel(p_sum_ref, p_sq_ref, rest_ref, out_ref):
        # p_sum_ref / p_sq_ref: (1, D) f32     rest_ref: (tb, Fr*D)   out_ref: (tb, D)
        tb = rest_ref.shape[0]
        p_sum = p_sum_ref[...]
        p_sq = p_sq_ref[...]

        r_sum = jnp.zeros((tb, D), jnp.float32)
        r_sq = jnp.zeros((tb, D), jnp.float32)
        for f in range(Fr):
            sl = rest_ref[:, pl.ds(f * D, D)].astype(jnp.float32)
            r_sum = r_sum + sl
            r_sq = r_sq + sl * sl

        s = r_sum + p_sum
        out_ref[...] = (0.5 * (s * s - r_sq - p_sq)).astype(out_ref.dtype)

    return kernel


# ----------------------------- wrapper ---------------------------------------


def re_factorization_machine(prefix_embed, rest_embed, *, reduce_sum=True, tb=None):
    """Pallas implementation of ReFactorizationMachine.forward.

    prefix_embed: (1, Fp, D)
    rest_embed:   (B, Fr, D)
    returns (B, 1) if reduce_sum else (B, D)
    """
    one, Fp, D = prefix_embed.shape
    B, Fr, D2 = rest_embed.shape
    assert one == 1 and D == D2

    out_dtype = jnp.promote_types(prefix_embed.dtype, rest_embed.dtype)

    # Hoist the (tiny) prefix reductions out of the kernel; compute in f32.
    pf32 = prefix_embed.astype(jnp.float32)
    p_sum = jnp.sum(pf32, axis=1)                 # (1, D) f32
    p_sq_sum = jnp.sum(pf32 * pf32, axis=1)       # (1, D) f32

    # Lane-dense layout: collapse (Fr, D) into the lane dim (contiguous -> free).
    rest2d = rest_embed.reshape(B, Fr * D)

    align = max(_sublane_tile(rest_embed.dtype), _sublane_tile(out_dtype))
    if tb is None:
        tb = _pick_batch_tile(B, Fr * D, rest_embed.dtype, out_dtype)
    tb = int(tb)
    if tb != B:
        assert tb % align == 0, f"tb must be a multiple of {align} (or equal to B)"
    grid = (pl.cdiv(B, tb),)

    p_sum_spec = pl.BlockSpec((1, D), lambda i: (0, 0))
    rest_spec = pl.BlockSpec((tb, Fr * D), lambda i: (i, 0))

    if reduce_sum:
        kernel = _make_reduce_kernel(Fr, D)
        # Single scalar: total prefix square-sum, resident in SMEM.
        p_sq_in = jnp.sum(p_sq_sum, axis=1, keepdims=True)   # (1, 1) f32
        p_sq_spec = pl.BlockSpec(memory_space=pltpu.MemorySpace.SMEM)
        out_shape = jax.ShapeDtypeStruct((B, 1), out_dtype)
        out_spec = pl.BlockSpec((tb, 1), lambda i: (i, 0))
    else:
        kernel = _make_noreduce_kernel(Fr, D)
        p_sq_in = p_sq_sum                                    # (1, D) f32
        p_sq_spec = pl.BlockSpec((1, D), lambda i: (0, 0))
        out_shape = jax.ShapeDtypeStruct((B, D), out_dtype)
        out_spec = pl.BlockSpec((tb, D), lambda i: (i, 0))

    return pl.pallas_call(
        kernel,
        out_shape=out_shape,
        grid_spec=pltpu.PrefetchScalarGridSpec(
            num_scalar_prefetch=0,
            grid=grid,
            in_specs=[p_sum_spec, p_sq_spec, rest_spec],
            out_specs=out_spec,
        ),
        compiler_params=pltpu.CompilerParams(
            # Batch tiles shard across the two TensorCores on v7x.
            dimension_semantics=("parallel",),
            # 64 MiB fits v7x's physical VMEM; ~8 MiB padded blocks double-buffer
            # with plenty of headroom for the f32 accumulators on every generation.
            vmem_limit_bytes=64 * 1024 * 1024,
        ),
    )(p_sum, p_sq_in, rest2d)


# ----------------------------- reference & test ------------------------------


def _reference(prefix_embed, rest_embed, reduce_sum=True):
    p_sum = jnp.sum(prefix_embed, axis=1)
    r_sum = jnp.sum(rest_embed, axis=1)
    square_of_sum = (p_sum + r_sum) ** 2
    p_sq = jnp.sum(prefix_embed ** 2, axis=1)
    r_sq = jnp.sum(rest_embed ** 2, axis=1)
    ix = square_of_sum - (p_sq + r_sq)
    if reduce_sum:
        ix = jnp.sum(ix, axis=1, keepdims=True)
    return 0.5 * ix


if __name__ == "__main__":
    key = jax.random.PRNGKey(0)
    k1, k2, k3, k4 = jax.random.split(key, 4)

    B, Fp, Fr, D = 8, 3, 5, 32
    prefix_embed = jax.random.normal(k1, (1, Fp, D), dtype=jnp.float32)
    rest_embed = jax.random.normal(k2, (B, Fr, D), dtype=jnp.float32)

    # reduce_sum=True path (default in the module)
    out = jax.block_until_ready(
        re_factorization_machine(prefix_embed, rest_embed, reduce_sum=True))
    ref = _reference(prefix_embed, rest_embed, reduce_sum=True)
    assert out.shape == (B, 1)
    assert jnp.allclose(out, ref, atol=1e-3, rtol=1e-3)

    # reduce_sum=False path
    out2 = jax.block_until_ready(
        re_factorization_machine(prefix_embed, rest_embed, reduce_sum=False))
    ref2 = _reference(prefix_embed, rest_embed, reduce_sum=False)
    assert out2.shape == (B, D)
    assert jnp.allclose(out2, ref2, atol=1e-3, rtol=1e-3)

    # Multi-step, pipelined grid path (tb divides B, 3 grid steps).
    B2 = 96
    rest2 = jax.random.normal(k3, (B2, Fr, D), dtype=jnp.float32)
    out3 = jax.block_until_ready(
        re_factorization_machine(prefix_embed, rest2, reduce_sum=True, tb=32))
    ref3 = _reference(prefix_embed, rest2, reduce_sum=True)
    assert out3.shape == (B2, 1)
    assert jnp.allclose(out3, ref3, atol=1e-3, rtol=1e-3)

    # Non-divisible B: partial last block (40 = 16 + 16 + 8) — masked writeback.
    B3 = 40
    rest3 = jax.random.normal(k4, (B3, Fr, D), dtype=jnp.float32)
    out4 = jax.block_until_ready(
        re_factorization_machine(prefix_embed, rest3, reduce_sum=True, tb=16))
    ref4 = _reference(prefix_embed, rest3, reduce_sum=True)
    assert out4.shape == (B3, 1)
    assert jnp.allclose(out4, ref4, atol=1e-3, rtol=1e-3)

    out5 = jax.block_until_ready(
        re_factorization_machine(prefix_embed, rest3, reduce_sum=False, tb=16))
    ref5 = _reference(prefix_embed, rest3, reduce_sum=False)
    assert out5.shape == (B3, D)
    assert jnp.allclose(out5, ref5, atol=1e-3, rtol=1e-3)

    print("KERNEL_OK")
</pallas_src>

<mosaic_0001>
module attributes {stable_mosaic.version = 11 : i64} {
  func.func @kernel(%arg0: i32, %arg1: memref<1x32xf32, #tpu.memory_space<vmem>>, %arg2: memref<1x1xf32, #tpu.memory_space<smem>>, %arg3: memref<8x160xf32, #tpu.memory_space<vmem>>, %arg4: memref<8x1xf32, #tpu.memory_space<vmem>>) attributes {dimension_semantics = [#tpu.dimension_semantics<parallel>], iteration_bounds = array<i64: 1>, scalar_prefetch = 0 : i64, scratch_operands = 0 : i64, tpu.core_type = #tpu.core_type<tc>, window_params = [{pipeline_mode = #tpu.pipeline_mode<synchronous>, transform_indices = @transform_0, window_bounds = array<i64: 1, 32>}, {transform_indices = @transform_1, window_bounds = array<i64: 1, 1>}, {transform_indices = @transform_2, window_bounds = array<i64: 8, 160>}, {transform_indices = @transform_3, window_bounds = array<i64: 8, 1>}]} {
    %c0 = arith.constant 0 : index
    %c0_0 = arith.constant 0 : index
    %0 = vector.load %arg1[%c0, %c0_0] : memref<1x32xf32, #tpu.memory_space<vmem>>, vector<1x32xf32>
    %c0_1 = arith.constant 0 : index
    %c0_2 = arith.constant 0 : index
    %1 = memref.load %arg2[%c0_1, %c0_2] : memref<1x1xf32, #tpu.memory_space<smem>>
    %cst = arith.constant 0.000000e+00 : f32
    %2 = vector.broadcast %cst : f32 to vector<8x32xf32>
    %cst_3 = arith.constant 0.000000e+00 : f32
    %3 = vector.broadcast %cst_3 : f32 to vector<8x32xf32>
    %c0_4 = arith.constant 0 : index
    %c0_5 = arith.constant 0 : index
    %4 = vector.load %arg3[%c0_4, %c0_5] : memref<8x160xf32, #tpu.memory_space<vmem>>, vector<8x32xf32>
    %5 = arith.addf %2, %4 : vector<8x32xf32>
    %6 = arith.mulf %4, %4 : vector<8x32xf32>
    %7 = arith.addf %3, %6 : vector<8x32xf32>
    %c0_6 = arith.constant 0 : index
    %c32 = arith.constant 32 : index
    %8 = vector.load %arg3[%c0_6, %c32] : memref<8x160xf32, #tpu.memory_space<vmem>>, vector<8x32xf32>
    %9 = arith.addf %5, %8 : vector<8x32xf32>
    %10 = arith.mulf %8, %8 : vector<8x32xf32>
    %11 = arith.addf %7, %10 : vector<8x32xf32>
    %c0_7 = arith.constant 0 : index
    %c64 = arith.constant 64 : index
    %12 = vector.load %arg3[%c0_7, %c64] : memref<8x160xf32, #tpu.memory_space<vmem>>, vector<8x32xf32>
    %13 = arith.addf %9, %12 : vector<8x32xf32>
    %14 = arith.mulf %12, %12 : vector<8x32xf32>
    %15 = arith.addf %11, %14 : vector<8x32xf32>
    %c0_8 = arith.constant 0 : index
    %c96 = arith.constant 96 : index
    %16 = vector.load %arg3[%c0_8, %c96] : memref<8x160xf32, #tpu.memory_space<vmem>>, vector<8x32xf32>
    %17 = arith.addf %13, %16 : vector<8x32xf32>
    %18 = arith.mulf %16, %16 : vector<8x32xf32>
    %19 = arith.addf %15, %18 : vector<8x32xf32>
    %c0_9 = arith.constant 0 : index
    %c128 = arith.constant 128 : index
    %20 = vector.load %arg3[%c0_9, %c128] : memref<8x160xf32, #tpu.memory_space<vmem>>, vector<8x32xf32>
    %21 = arith.addf %17, %20 : vector<8x32xf32>
    %22 = arith.mulf %20, %20 : vector<8x32xf32>
    %23 = arith.addf %19, %22 : vector<8x32xf32>
    %24 = vector.broadcast %0 : vector<1x32xf32> to vector<8x32xf32>
    %25 = arith.addf %21, %24 : vector<8x32xf32>
    %26 = arith.mulf %25, %25 : vector<8x32xf32>
    %27 = arith.subf %26, %23 : vector<8x32xf32>
    %cst_10 = arith.constant dense<0.000000e+00> : vector<8xf32>
    %28 = vector.multi_reduction <add>, %27, %cst_10 [1] : vector<8x32xf32> to vector<8xf32>
    %29 = vector.shape_cast %28 : vector<8xf32> to vector<8x1xf32>
    %30 = vector.broadcast %1 : f32 to vector<8x1xf32>
    %31 = arith.subf %29, %30 : vector<8x1xf32>
    %cst_11 = arith.constant 5.000000e-01 : f32
    %32 = vector.broadcast %cst_11 : f32 to vector<8x1xf32>
    %33 = arith.mulf %32, %31 : vector<8x1xf32>
    %c0_12 = arith.constant 0 : index
    %c0_13 = arith.constant 0 : index
    %34 = vector.load %arg4[%c0_12, %c0_13] : memref<8x1xf32, #tpu.memory_space<vmem>>, vector<8x1xf32>
    tpu.vector_store %arg4[%c0_12, %c0_13], %33 {strides = array<i32>} : memref<8x1xf32, #tpu.memory_space<vmem>>, vector<8x1xf32>,
    return
  }
  func.func @transform_0(%arg0: i32) -> (i32, i32) {
    %c0_i32 = arith.constant 0 : i32
    %c0_i32_0 = arith.constant 0 : i32
    %c0_i32_1 = arith.constant 0 : i32
    return %c0_i32, %c0_i32_0 : i32, i32
  }
  func.func @transform_1(%arg0: i32) -> (i32, i32) {
    %c0_i32 = arith.constant 0 : i32
    %c0_i32_0 = arith.constant 0 : i32
    %c0_i32_1 = arith.constant 0 : i32
    return %c0_i32, %c0_i32_0 : i32, i32
  }
  func.func @transform_2(%arg0: i32) -> (i32, i32) {
    %c0_i32 = arith.constant 0 : i32
    %c0_i32_0 = arith.constant 0 : i32
    return %arg0, %c0_i32 : i32, i32
  }
  func.func @transform_3(%arg0: i32) -> (i32, i32) {
    %c0_i32 = arith.constant 0 : i32
    %c0_i32_0 = arith.constant 0 : i32
    return %arg0, %c0_i32 : i32, i32
  }
}

</mosaic_0001>

<bundles_post_ra>
// kernel: tpu_custom_call.1
= control target key start
LH: loop header
LB: loop body
LE: loop exit
PB: predicated region body
PF: predicated region fallthrough
CT: control target
= control target key end

     0   :  { %9 = vsyncpa [#allocation4], 0  ;;  %s113_s12 = smov [#allocation3]   ;;  %s149_s0 = inlined_call_operand.vmem [shape: f32[1,32], index: 0, kind: input, shape index: {}]   ;;  %s150_s1 = inlined_call_operand.<no memory space> [shape: f32[1,1], index: 1, kind: input, shape index: {}]   ;;  %s151_s2 = inlined_call_operand.hbm [shape: f32[8,160], index: 2, kind: input, shape index: {}]   ;;  %s152_s3 = inlined_call_operand.vmem [shape: f32[8,1], index: 3, kind: output, shape index: {}]  }
   0x1   :  { %s20_s13 = sshll.u32 %s113_s12, 4  ;;  %s21_s13 = int_to_ptr.vmem [resolvable:$true] %s20_s13 }
   0x2   :  { %s99_s14 = scalar_lea.vmem %s21_s13, 256  ;;  %p104_p1 = scmp.lt.s32.totalorder %s21_s13, %s21_s13 }
   0x3   :  { %p100_p0 = scmp.ne.s32.totalorder %s21_s13, %s99_s14  ;;  %p105_p2 = scmp.lt.s32.totalorder %s99_s14, %s99_s14 }
   0x5   :  { %p106_p3 = por %p105_p2, %p104_p1 }
   0x7   :  { %p107_p4 = pnand %p106_p3, %p100_p0 }
   0x9   :  { %110 = shalt.err (!%p107_p4)
}
   0xa   :  { %23 = dma.hbm_to_vmem [thread:$0]  %s151_s2, 256, %s21_s13, [#allocation4]  }
   0xb   :  { %111 = dma.done.wait [#allocation4], 256  }
   0xc   :  { %112 = vsyncadd [#allocation4], 4294967040  ;;  %v29_v0 = vld [vmem:[#allocation3] sm:$0xff]  ;;  %s114_s17 = smov 96   ;;  %s115_s18 = smov 32   ;;  %v59_v9 = vld [vmem:[#allocation3 + $0x8] sm:$0xff]  ;;  %v76_v23 = vstv %s150_s1 }
   0xd   :  { %34 = vrot.lane.b32.xlu0 %v29_v0, %s114_s17  ;;  %51 = vrot.lane.b32.xlu1 %v29_v0, %s115_s18  ;;  %v31_v1 = vmul.f32 %v29_v0, %v29_v0  ;;  %s116_s19 = smov 64   ;;  %v86_v13 = vld [vmem:[%s149_s0] ss:$0 sm:$0xff]  ;;  %v61_v16 = vmul.f32 %v59_v9, %v59_v9  ;;  %vm72_vm0 = vcmask 261120   ;;  %vm79_vm1 = vcmask 7168  }
  0x11   :  { %43 = vrot.lane.b32.xlu0 %v29_v0, %s116_s19  ;;  %39 = vrot.lane.b32.xlu1 %v31_v1, %s114_s17 }
  0x15   :  { %47 = vrot.lane.b32.xlu0 %v31_v1, %s116_s19  ;;  %55 = vrot.lane.b32.xlu1 %v31_v1, %s115_s18 }
  0x7f   :  { %v35_v2 = vpop.permute.xlu0 %34  ;;  %v52_v3 = vpop.permute.xlu1 %51 }
  0x80   :  { %v37_v4 = vadd.f32 %v35_v2, %v29_v0 }
  0x83   :  { %v44_v5 = vpop.permute.xlu0 %43  ;;  %v40_v6 = vpop.permute.xlu1 %39 }
  0x84   :  { %v46_v7 = vadd.f32 %v44_v5, %v37_v4  ;;  %v42_v8 = vadd.f32 %v40_v6, %v31_v1 }
  0x86   :  { %v54_v10 = vadd.f32 %v52_v3, %v46_v7 }
  0x87   :  { %v48_v11 = vpop.permute.xlu0 %47  ;;  %v56_v12 = vpop.permute.xlu1 %55 }
  0x88   :  { %v60_v14 = vadd.f32 %v59_v9, %v54_v10  ;;  %v50_v15 = vadd.f32 %v48_v11, %v42_v8 }
  0x8a   :  { %v58_v17 = vadd.f32 %v56_v12, %v50_v15  ;;  %v69_v18 = vadd.f32 %v86_v13, %v60_v14 }
  0x8c   :  { %v62_v19 = vadd.f32 %v61_v16, %v58_v17  ;;  %v70_v20 = vmul.f32 %v69_v18, %v69_v18 }
  0x8e   :  { %v71_v21 = vsub.f32 %v70_v20, %v62_v19 }
  0x90   :  { %v73_v22 = vsel %vm72_vm0, %v71_v21, 0.0 }
  0x91   :  { %74 = vadd.xlane.f32.xlu0 %v73_v22 }
 0x11a   :  { %v75_v24 = vpop.xlane.xlu0 %74 }
 0x11b   :  { %v77_v25 = vsub.f32 %v75_v24, %v76_v23 }
 0x11d   :  { %v78_v26 = vmul.f32 0.5, %v77_v25 }
 0x11f   :  { %80 = vst.msk [vmem:[%s152_s3] sm:$0xff] %vm79_vm1, %v78_v26 }
 0x120   :  { %85 = vsyncpa [#allocation4], 1 }

</bundles_post_ra>
